<compile_context>
chip_gen: v6e
topology: v6e:2x2x1
jax: 0.10.0
libtpu: 0.0.40
codegen_flags: <defaults>
</compile_context>

<pallas_src>
import functools

import jax
import jax.numpy as jnp
from jax.experimental import pallas as pl
from jax.experimental.pallas import tpu as pltpu


# ----------------------------------------------------------------------------
# one-time self check of the pltpu.roll direction convention on this backend
# (the main kernel adapts either way -- pure data movement stays bit-exact).
# ----------------------------------------------------------------------------
def _roll_probe_kernel(x_ref, o_ref):
    o_ref[...] = pltpu.roll(x_ref[...], 1, axis=1)


def roll_matches_jnp():
    """True iff pltpu.roll(x, s, axis) == jnp.roll(x, s, axis) here."""
    x = jnp.arange(8 * 128, dtype=jnp.float32).reshape(8, 128)
    y = pl.pallas_call(
        _roll_probe_kernel,
        out_shape=jax.ShapeDtypeStruct((8, 128), jnp.float32))(x)
    return bool(jnp.array_equal(y, jnp.roll(x, 1, axis=1)))


# ----------------------------------------------------------------------------
# fused TinyVGG kernel: conv->relu->conv->relu->pool (x2) -> flatten -> linear
# ----------------------------------------------------------------------------
def _make_tinyvgg_kernel(roll_fwd):
    f32 = jnp.float32

    def rollv(v, s, ax):
        # jnp.roll semantics: out[i] = v[i - s]; flips if the backend differs.
        if not roll_fwd:
            s = (v.shape[ax] - s) % v.shape[ax]
        return pltpu.roll(v, s, axis=ax)

    def kernel(x_ref, w1a_ref, b1a_ref, w1b_ref, b1b_ref,
               w2a_ref, b2a_ref, w2b_ref, b2b_ref, wl_ref, bl_ref,
               o_ref,
               t1_ref, a1_ref, c1_ref, p1_ref,
               t2_ref, a2_ref, c2_ref, p2_ref):
        cin = x_ref.shape[1]
        hidden, n, _ = a1_ref.shape            # block-1 spatial size (128)
        pr = n // 4                            # packed rows in block 2 (32)
        out_dim = o_ref.shape[-1]

        # ---- masks / selectors, hoisted (iota is not CSE'd by JAX) ---------
        lane = jax.lax.broadcasted_iota(jnp.int32, (1, n), 1)
        row1 = jax.lax.broadcasted_iota(jnp.int32, (n, 1), 0)
        row2 = jax.lax.broadcasted_iota(jnp.int32, (pr, 1), 0)
        not_c0 = (lane != 0).astype(f32)
        not_cL = (lane != n - 1).astype(f32)
        not_r0 = (row1 != 0).astype(f32)
        not_rL = (row1 != n - 1).astype(f32)
        even_l = (lane % 2 == 0).astype(f32)
        odd_l = 1.0 - even_l
        not_x0 = (lane >= 2).astype(f32)       # zero img col 0   (lanes 0, 1)
        not_xL = (lane < n - 2).astype(f32)    # zero img col n/2-1
        up_even = even_l * (row2 != 0).astype(f32)        # (pr, n)
        dn_odd = odd_l * (row2 != pr - 1).astype(f32)     # (pr, n)
        pri = jax.lax.broadcasted_iota(jnp.int32, (pr, n), 0)
        prj = jax.lax.broadcasted_iota(jnp.int32, (pr, n), 1)
        sel_r0 = (prj == 4 * pri).astype(f32)              # picks rows 4r
        sel_r2 = (prj == 4 * pri + 2).astype(f32)          # picks rows 4r + 2

        def exact_select(sel, v):
            # 0/1 row selection on the (now otherwise idle) MXU, exact at
            # DEFAULT precision: both bf16 halves of v enter the MXU unrounded.
            hi = v.astype(jnp.bfloat16).astype(f32)
            lo = v - hi
            return (jnp.dot(sel, hi, preferred_element_type=f32)
                    + jnp.dot(sel, lo, preferred_element_type=f32))

        # ---- block-1 taps: tap[c, 3*ky + kx][y, x] = in_c[y+ky-1, x+kx-1] --
        # built once per INPUT channel (hoisted out of the Cout loop) with XLU
        # rolls + border masks; cached in VMEM scratch.
        def build_taps1(read_plane, n_ch):
            for c in range(n_ch):
                x = read_plane(c).astype(f32)
                for kx in range(3):
                    if kx == 0:
                        v = rollv(x, 1, 1) * not_c0        # in[y, x-1]
                    elif kx == 1:
                        v = x                              # in[y, x  ]
                    else:
                        v = rollv(x, n - 1, 1) * not_cL    # in[y, x+1]
                    t1_ref[c, kx] = (rollv(v, 1, 0) * not_r0
                                     ).astype(t1_ref.dtype)          # y-1
                    t1_ref[c, 3 + kx] = v.astype(t1_ref.dtype)       # y
                    t1_ref[c, 6 + kx] = (rollv(v, n - 1, 0) * not_rL
                                         ).astype(t1_ref.dtype)      # y+1

        # ---- block-2 taps, interleaved layout ------------------------------
        # plane[r, 2*x + h] = img[2*r + h, x]; horizontal neighbours are +/-2
        # lanes, vertical neighbours are the other lane parity (+/-1 lane and
        # possibly +/-1 sublane).  All shapes stay (pr, n) = (32, 128).
        def build_taps2(read_plane, n_ch):
            for c in range(n_ch):
                x = read_plane(c).astype(f32)
                for kx in range(3):
                    if kx == 0:
                        v = rollv(x, 2, 1) * not_x0        # img[y, x-1]
                    elif kx == 1:
                        v = x
                    else:
                        v = rollv(x, n - 2, 1) * not_xL    # img[y, x+1]
                    vp = rollv(v, 1, 1)                    # lanes + 1
                    vm = rollv(v, n - 1, 1)                # lanes - 1
                    up = odd_l * vp + up_even * rollv(vm, 1, 0)
                    dn = even_l * vm + dn_odd * rollv(vp, pr - 1, 0)
                    t2_ref[c, kx] = up.astype(t2_ref.dtype)          # y-1
                    t2_ref[c, 3 + kx] = v.astype(t2_ref.dtype)       # y
                    t2_ref[c, 6 + kx] = dn.astype(t2_ref.dtype)      # y+1

        # ---- 3x3 conv + ReLU: VPU shift-and-MAC over the cached taps -------
        def conv3x3_relu(tap_ref, w_ref, b_ref, n_in, n_out, out_ref):
            # w_ref: flattened torch [Cout, Cin, 3, 3] in SMEM.
            for co in range(n_out):
                acc = jnp.zeros(out_ref.shape[1:], f32) + b_ref[co]
                for ci in range(n_in):
                    base = (co * n_in + ci) * 9
                    for k in range(9):
                        w = w_ref[base + k].astype(tap_ref.dtype)
                        acc = acc + (w * tap_ref[ci, k]).astype(f32)
                out_ref[co] = jnp.maximum(acc, 0.0)

        # ===================== convBlock1 (n x n, plain layout) =============
        build_taps1(lambda c: x_ref[0, c], cin)
        conv3x3_relu(t1_ref, w1a_ref, b1a_ref, cin, hidden, a1_ref)
        build_taps1(lambda c: a1_ref[c], hidden)
        conv3x3_relu(t1_ref, w1b_ref, b1b_ref, hidden, hidden, c1_ref)

        # ---- 2x2 max-pool 1 + repack into the lane-dense interleaved layout
        for c in range(hidden):
            xc = c1_ref[c]
            rmax = jnp.maximum(xc, rollv(xc, n - 1, 0))      # rows i, i+1
            cmax = jnp.maximum(rmax, rollv(rmax, n - 1, 1))  # full 2x2 window
            r0 = exact_select(sel_r0, cmax)                  # cmax[4r    , :]
            r2 = exact_select(sel_r2, cmax)                  # cmax[4r + 2, :]
            p1_ref[c] = even_l * r0 + odd_l * rollv(r2, 1, 1)

        # ===================== convBlock2 (interleaved layout) ==============
        build_taps2(lambda c: p1_ref[c], hidden)
        conv3x3_relu(t2_ref, w2a_ref, b2a_ref, hidden, hidden, a2_ref)
        build_taps2(lambda c: a2_ref[c], hidden)
        conv3x3_relu(t2_ref, w2b_ref, b2b_ref, hidden, hidden, c2_ref)

        # ---- 2x2 max-pool 2: window = 4 consecutive lanes.  Result stays
        # "spread" (valid at lanes 4*j); the classifier weight is pre-spread
        # in the wrapper so no lane compaction is needed.
        for c in range(hidden):
            xc = c2_ref[c]
            m1 = jnp.maximum(xc, rollv(xc, n - 1, 1))
            p2_ref[c] = jnp.maximum(m1, rollv(m1, n - 2, 1))

        # ---- classifier: per-channel multiply + full reduce ----------------
        lane_o = jax.lax.broadcasted_iota(jnp.int32, (1, out_dim), 1)
        res = jnp.zeros((1, out_dim), f32)
        for o in range(out_dim):
            acc = jnp.zeros((pr, n), f32)
            for c in range(hidden):
                acc = acc + p2_ref[c] * wl_ref[o, c]
            res = res + (lane_o == o).astype(f32) * (jnp.sum(acc) + bl_ref[o])
        o_ref[0] = res

    return kernel


# ----------------------------------------------------------------------------
# wrapper
# ----------------------------------------------------------------------------
@functools.partial(jax.jit, static_argnames=("tap_dtype", "roll_fwd"))
def tinyvgg_forward(x, params, tap_dtype=jnp.float32, roll_fwd=True):
    # tap_dtype=jnp.bfloat16 is recommended on v6e/v7x (bf16 VPU, half the tap
    # cache traffic); the float32 default keeps the kernel exact and v5e-safe.
    (w1a, b1a), (w1b, b1b), (w2a, b2a), (w2b, b2b), (wl, bl) = params
    n, cin, h, w = x.shape
    assert h == w and h % 4 == 0
    hidden = w1a.shape[0]
    out_dim = wl.shape[1]
    h3 = h // 4                    # spatial size after the two 2x2 pools
    pr = h // 4                    # packed rows used by block 2 / classifier
    cmax_ch = max(cin, hidden)

    # torch nn.Flatten over NCHW -> (OUT, C, h3, h3); then "spread" the x
    # index to lane 4*x to match the kernel's pool-2 output layout.
    wl_r = wl.T.reshape(out_dim, hidden, h3, h3)
    wl_sp = jnp.zeros((out_dim, hidden, h3, h), wl.dtype)
    wl_sp = wl_sp.at[..., 0::4].set(wl_r)

    smem = pl.BlockSpec(memory_space=pltpu.MemorySpace.SMEM)
    out = pl.pallas_call(
        _make_tinyvgg_kernel(roll_fwd),
        out_shape=jax.ShapeDtypeStruct((n, 1, out_dim), jnp.float32),
        grid=(n,),
        in_specs=[
            pl.BlockSpec((1, cin, h, w), lambda i: (i, 0, 0, 0)),   # image
            smem, smem,                                             # w1a, b1a
            smem, smem,                                             # w1b, b1b
            smem, smem,                                             # w2a, b2a
            smem, smem,                                             # w2b, b2b
            pl.BlockSpec((out_dim, hidden, h3, h),
                         lambda i: (0, 0, 0, 0)),                   # linear W
            smem,                                                   # linear b
        ],
        out_specs=pl.BlockSpec((1, 1, out_dim), lambda i: (i, 0, 0)),
        scratch_shapes=[
            pltpu.VMEM((cmax_ch, 9, h, h), tap_dtype),     # block-1 tap cache
            pltpu.VMEM((hidden, h, h), jnp.float32),       # conv1a out
            pltpu.VMEM((hidden, h, h), jnp.float32),       # conv1b out
            pltpu.VMEM((hidden, pr, h), jnp.float32),      # pool1 (interleaved)
            pltpu.VMEM((hidden, 9, pr, h), tap_dtype),     # block-2 tap cache
            pltpu.VMEM((hidden, pr, h), jnp.float32),      # conv2a out
            pltpu.VMEM((hidden, pr, h), jnp.float32),      # conv2b out
            pltpu.VMEM((hidden, pr, h), jnp.float32),      # pool2 (spread)
        ],
        compiler_params=pltpu.CompilerParams(
            dimension_semantics=("parallel",)),
    )(x, w1a.reshape(-1), b1a, w1b.reshape(-1), b1b,
      w2a.reshape(-1), b2a, w2b.reshape(-1), b2b, wl_sp, bl)
    return out.reshape(n, out_dim)


# ----------------------------------------------------------------------------
# pure-JAX reference (HIGHEST precision so the reference itself is f32-exact)
# ----------------------------------------------------------------------------
def _ref_forward(x, params):
    (w1a, b1a), (w1b, b1b), (w2a, b2a), (w2b, b2b), (wl, bl) = params
    hp = jax.lax.Precision.HIGHEST

    def conv(x, w, b):
        y = jax.lax.conv_general_dilated(
            x, w, window_strides=(1, 1), padding="SAME",
            dimension_numbers=("NCHW", "OIHW", "NCHW"), precision=hp)
        return jnp.maximum(y + b[None, :, None, None], 0.0)

    def pool(x):
        return jax.lax.reduce_window(
            x, -jnp.inf, jax.lax.max,
            window_dimensions=(1, 1, 2, 2), window_strides=(1, 1, 2, 2),
            padding="VALID")

    h = pool(conv(conv(x, w1a, b1a), w1b, b1b))
    h = pool(conv(conv(h, w2a, b2a), w2b, b2b))
    h = h.reshape(h.shape[0], -1)
    return jnp.dot(h, wl, precision=hp) + bl[None, :]


if __name__ == "__main__":
    # The classifier's hard-coded hidden*32*32 implies a 128x128 input
    # (two 2x2 max-pools: 128 -> 64 -> 32).  Keep batch/channels small;
    # batch=2 also keeps both v7x TensorCores busy via the parallel grid axis.
    N, CIN, H, W = 2, 3, 128, 128
    HIDDEN, OUT = 4, 3

    key = jax.random.PRNGKey(0)
    keys = jax.random.split(key, 8)
    x = jax.random.normal(keys[0], (N, CIN, H, W), jnp.float32)

    def conv_params(k, cin, cout):
        k1, k2 = jax.random.split(k)
        w = jax.random.normal(k1, (cout, cin, 3, 3), jnp.float32) * 0.1
        b = jax.random.normal(k2, (cout,), jnp.float32) * 0.1
        return w, b

    p1a = conv_params(keys[1], CIN, HIDDEN)
    p1b = conv_params(keys[2], HIDDEN, HIDDEN)
    p2a = conv_params(keys[3], HIDDEN, HIDDEN)
    p2b = conv_params(keys[4], HIDDEN, HIDDEN)
    wl = jax.random.normal(keys[5], (HIDDEN * 32 * 32, OUT), jnp.float32) * 0.01
    bl = jax.random.normal(keys[6], (OUT,), jnp.float32) * 0.01
    params = (p1a, p1b, p2a, p2b, (wl, bl))

    # Probe the pltpu.roll direction once; the kernel adapts either way.
    rf = roll_matches_jnp()

    y = jax.block_until_ready(tinyvgg_forward(x, params, roll_fwd=rf))
    assert y.shape == (N, OUT) and y.dtype == jnp.float32

    y_ref = jax.block_until_ready(_ref_forward(x, params))
    # Shifts and pooling are now exact data movement (XLU rolls + exact 0/1
    # selection), so the only remaining difference vs. the HIGHEST-precision
    # reference is f32 summation order -- 20x tighter than the previous
    # MXU-shift version.
    assert jnp.allclose(y, y_ref, atol=1e-3, rtol=1e-3), (
        f"max abs diff {jnp.max(jnp.abs(y - y_ref))}")

    print("KERNEL_OK")
</pallas_src>

<mosaic_0001>
module attributes {stable_mosaic.version = 11 : i64} {
  func.func @_roll_probe_kernel(%arg0: memref<8x128xf32, #tpu.memory_space<vmem>>, %arg1: memref<8x128xf32, #tpu.memory_space<vmem>>) attributes {dimension_semantics = [], scalar_prefetch = 0 : i64, scratch_operands = 0 : i64, tpu.core_type = #tpu.core_type<tc>} {
    %c0 = arith.constant 0 : index
    %c0_0 = arith.constant 0 : index
    %0 = vector.load %arg0[%c0, %c0_0] : memref<8x128xf32, #tpu.memory_space<vmem>>, vector<8x128xf32>
    %c1_i32 = arith.constant 1 : i32
    %1 = tpu.dynamic_rotate %0 by %c1_i32 dim 1 : vector<8x128xf32>, i32 -> vector<8x128xf32>
    %c0_1 = arith.constant 0 : index
    %c0_2 = arith.constant 0 : index
    %2 = vector.load %arg1[%c0_1, %c0_2] : memref<8x128xf32, #tpu.memory_space<vmem>>, vector<8x128xf32>
    tpu.vector_store %arg1[%c0_1, %c0_2], %1 {strides = array<i32>} : memref<8x128xf32, #tpu.memory_space<vmem>>, vector<8x128xf32>,
    return
  }
}

</mosaic_0001>

<bundles_post_ra>
// kernel: tpu_custom_call.1
= control target key start
LH: loop header
LB: loop body
LE: loop exit
PB: predicated region body
PF: predicated region fallthrough
CT: control target
= control target key end

     0   :  { %6 = vsyncpa [#allocation3], 0  ;;  %s106_s0 = inlined_call_operand.hbm [shape: f32[8,128], index: 0, kind: input, shape index: {}]   ;;  %s107_s1 = inlined_call_operand.hbm [shape: f32[8,128], index: 1, kind: output, shape index: {}]  }
   0x1   :  { %7 = vsyncpa [#allocation4], 0  ;;  %s87_s6 = smov [#allocation2]  }
   0x2   :  { %s14_s7 = sshll.u32 %s87_s6, 4  ;;  %s15_s7 = int_to_ptr.vmem [resolvable:$true] %s14_s7 }
   0x3   :  { %s51_s8 = scalar_lea.vmem %s15_s7, 128  ;;  %p56_p1 = scmp.lt.s32.totalorder %s15_s7, %s15_s7 }
   0x4   :  { %p52_p0 = scmp.ne.s32.totalorder %s15_s7, %s51_s8  ;;  %p57_p2 = scmp.lt.s32.totalorder %s51_s8, %s51_s8 }
   0x6   :  { %p58_p3 = por %p57_p2, %p56_p1 }
   0x8   :  { %p59_p4 = pnand %p58_p3, %p52_p0 }
   0xa   :  { %62 = shalt.err (!%p59_p4)
}
   0xb   :  { %17 = dma.hbm_to_vmem [thread:$0]  %s106_s0, 128, %s15_s7, [#allocation3]  }
   0xc   :  { %83 = dma.done.wait [#allocation3], 128  }
   0xd   :  { %84 = vsyncadd [#allocation3], 4294967168  ;;  %v21_v0 = vld [vmem:[#allocation2] sm:$0xff]  ;;  %s88_s11 = smov 1   ;;  %s89_s12 = smov [#allocation5]  }
   0xe   :  { %22 = vrot.lane.b32.xlu0 %v21_v0, %s88_s11  ;;  %s31_s13 = sshll.u32 %s89_s12, 4  ;;  %s32_s13 = int_to_ptr.vmem [resolvable:$true] %s31_s13 }
   0xf   :  { %s63_s14 = scalar_lea.vmem %s32_s13, 128  ;;  %p68_p6 = scmp.lt.s32.totalorder %s32_s13, %s32_s13 }
  0x10   :  { %p64_p5 = scmp.ne.s32.totalorder %s32_s13, %s63_s14  ;;  %p69_p7 = scmp.lt.s32.totalorder %s63_s14, %s63_s14 }
  0x12   :  { %p70_p8 = por %p69_p7, %p68_p6 }
  0x14   :  { %p71_p9 = pnand %p70_p8, %p64_p5 }
  0x80   :  { %v23_v1 = vpop.permute.xlu0 %22 }
  0x81   :  { %24 = vst [vmem:[#allocation5] sm:$0xff] %v23_v1 }
  0x82   :  { %74 = shalt.err (!%p71_p9)
}
  0x83   :  { %34 = dma.vmem_to_hbm [thread:$0]  %s32_s13, 128, %s107_s1, [#allocation4]  }
  0x84   :  { %85 = dma.done.wait [#allocation4], 128  }
  0x85   :  { %86 = vsyncadd [#allocation4], 4294967168 }
  0x86   :  { %38 = vsyncpa [#allocation3], 1 }
  0x87   :  { %39 = vsyncpa [#allocation4], 1 }

</bundles_post_ra>
